<compile_context>
chip_gen: v7x
topology: tpu7x:2x2x1
jax: 0.10.0
libtpu: 0.0.40
codegen_flags: <defaults>
</compile_context>

<pallas_src>
import functools
import math

import numpy as np
import jax
import jax.numpy as jnp
from jax.experimental import pallas as pl
from jax.experimental.pallas import tpu as pltpu

_LANES = 128
_MIB = 1024 * 1024


# ---------------------------------------------------------------------------
# Chip / tile / VMEM selection
# ---------------------------------------------------------------------------
def _cdiv(a, b):
    return (a + b - 1) // b


def _round_up(x, m):
    return _cdiv(x, m) * m


def _sublane_pack(dtype):
    # 8 for f32, 16 for bf16, 32 for int8/fp8.
    return max(8, 32 // np.dtype(dtype).itemsize)


@functools.lru_cache(maxsize=None)
def _chip_params():
    """Returns (target_block_bytes, vmem_budget_cap, lowp_affine_default,
    two_tensorcores)."""
    vmem_cap = None
    gen = None
    try:
        info = pltpu.get_tpu_info()
        cap = int(getattr(info, "vmem_capacity_bytes", 0))
        if cap > 0:
            vmem_cap = cap
    except Exception:
        pass
    try:
        kind = jax.devices()[0].device_kind.lower()
        for g in (7, 6, 5, 4, 3):
            if ("v%d" % g) in kind:
                gen = g
                break
    except Exception:
        pass
    if vmem_cap is None:
        # Only fall back to the conservative (small) config when the platform
        # is genuinely unknown; v5e/v6e are known to have 128 MiB VMEM/TC.
        vmem_cap = 128 * _MIB if (gen is not None and gen <= 6) else 64 * _MIB

    small_vmem = vmem_cap <= 96 * _MIB          # v7x-class (64 MiB VMEM/TC)
    if small_vmem:
        target_block, budget_cap = 4 * _MIB, 48 * _MIB
    else:                                        # v5e / v6e (128 MiB VMEM/TC)
        target_block, budget_cap = 8 * _MIB, 100 * _MIB

    lowp_affine = gen is not None and gen >= 6   # bf16 VALU exists on v6e/v7x
    two_cores = (gen is not None and gen >= 7) or (gen is None and small_vmem)
    return target_block, budget_cap, lowp_affine, two_cores


def _vmem_needed(tile, hidden, itemsize):
    # Double-buffered in/out blocks + f32 temporaries + slack.
    block = tile * hidden * itemsize
    return 4 * block + 3 * tile * hidden * 4 + 4 * _MIB


def _tile_and_vmem(rows, hidden, dtype):
    """Pick a row tile (multiple of the sublane pack, bytes-driven) and an
    explicit VMEM budget.  No padding is required: the grid is cdiv-based and
    Pallas masks the boundary block."""
    itemsize = np.dtype(dtype).itemsize
    pack = _sublane_pack(dtype)
    target_block, budget_cap, _, two_cores = _chip_params()

    per_row = hidden * itemsize
    tile = max(pack, (target_block // max(per_row, 1)) // pack * pack)
    if tile >= rows:
        tile = rows                      # full-extent block is always legal
    grid = _cdiv(rows, tile)

    if grid == 1 and rows > 2 * pack:
        # Split into two blocks: feeds both TensorCores on v7x and enables
        # load/compute/store pipelining everywhere.
        tile = max(pack, _round_up(_cdiv(rows, 2), pack))
    elif two_cores and grid % 2 == 1 and 3 <= grid <= 16:
        # Even-out a small odd grid so the two TensorCores are balanced,
        # if the bigger block still fits the VMEM budget.
        cand = max(pack, _round_up(_cdiv(rows, grid - 1), pack))
        if (_cdiv(rows, cand) % 2 == 0
                and _vmem_needed(cand, hidden, itemsize) <= budget_cap):
            tile = cand

    needed = _vmem_needed(tile, hidden, itemsize)
    vmem_limit = int(min(budget_cap, max(needed, 32 * _MIB)))
    return tile, vmem_limit


# ---------------------------------------------------------------------------
# Row-tiled kernel (hidden >= 128: the common LayerNorm case)
# ---------------------------------------------------------------------------
def _ln_rows_kernel(x_ref, w_ref, b_ref, o_ref, *, eps, affine_in_input_dtype):
    x = x_ref[...].astype(jnp.float32)
    mean = jnp.mean(x, axis=-1, keepdims=True)
    xc = x - mean
    var = jnp.mean(xc * xc, axis=-1, keepdims=True)
    inv = jax.lax.rsqrt(var + eps)

    if affine_in_input_dtype:
        # gamma/beta are pre-cast to the input dtype in the wrapper; bf16
        # VALU on v6e/v7x halves the elementwise work of the scale+shift.
        xn = (xc * inv).astype(o_ref.dtype)
        o_ref[...] = (xn * w_ref[...] + b_ref[...]).astype(o_ref.dtype)
    else:
        # gamma/beta are pre-cast to f32 in the wrapper (apex parity).
        o_ref[...] = (xc * inv * w_ref[...] + b_ref[...]).astype(o_ref.dtype)


def _ln_rows(x2, gamma2, beta2, *, eps, affine_in_input_dtype):
    rows, hidden = x2.shape
    tile, vmem_limit = _tile_and_vmem(rows, hidden, x2.dtype)
    grid = _cdiv(rows, tile)

    kernel = functools.partial(_ln_rows_kernel, eps=eps,
                               affine_in_input_dtype=affine_in_input_dtype)

    return pl.pallas_call(
        kernel,
        out_shape=jax.ShapeDtypeStruct((rows, hidden), x2.dtype),
        grid_spec=pltpu.PrefetchScalarGridSpec(
            num_scalar_prefetch=0,
            grid=(grid,),
            in_specs=[
                pl.BlockSpec((tile, hidden), lambda i: (i, 0)),
                pl.BlockSpec((1, hidden), lambda i: (0, 0)),   # resident gamma
                pl.BlockSpec((1, hidden), lambda i: (0, 0)),   # resident beta
            ],
            out_specs=pl.BlockSpec((tile, hidden), lambda i: (i, 0)),
        ),
        compiler_params=pltpu.CompilerParams(
            dimension_semantics=("parallel",),   # shards grid across v7x cores
            vmem_limit_bytes=vmem_limit,
        ),
    )(x2, gamma2, beta2)


# ---------------------------------------------------------------------------
# Lane-folded kernel (hidden < 128 dividing 128): fold rows into the 128-lane
# axis so stores stay lane-dense; per-segment stats via block-diag matmul.
# ---------------------------------------------------------------------------
def _segment_dot_f32(v, seg):
    """f32-accurate v @ seg even if the MXU truncates f32 inputs to bf16:
    split v into an exactly-bf16-representable high part plus a residual
    (seg is a 0/1 matrix, exactly representable, so it needs no split)."""
    v_hi = v.astype(jnp.bfloat16).astype(jnp.float32)
    v_lo = v - v_hi
    return (jnp.dot(v_hi, seg, preferred_element_type=jnp.float32)
            + jnp.dot(v_lo, seg, preferred_element_type=jnp.float32))


def _ln_folded_kernel(x_ref, w_ref, b_ref, seg_ref, o_ref, *, eps, inv_h):
    # x_ref: (tile, 128) where each 128-lane row holds `fold` original rows.
    # seg_ref: (128, 128) block-diagonal ones matrix; x @ seg gives every lane
    # the sum over its own hidden-size segment.
    x = x_ref[...].astype(jnp.float32)
    seg = seg_ref[...]
    mean = _segment_dot_f32(x, seg) * inv_h
    xc = x - mean
    var = _segment_dot_f32(xc * xc, seg) * inv_h
    inv = jax.lax.rsqrt(var + eps)
    o_ref[...] = (xc * inv * w_ref[...] + b_ref[...]).astype(o_ref.dtype)


def _ln_folded(x2, gamma_f32, beta_f32, *, eps):
    rows, hidden = x2.shape
    fold = _LANES // hidden

    # Fold `fold` consecutive rows into one 128-lane row.  The reshape is a
    # free row-major view; only a non-multiple row count needs a (tiny) pad.
    rows_p = _round_up(rows, fold)
    xr = x2 if rows_p == rows else jnp.pad(x2, ((0, rows_p - rows), (0, 0)))
    xr = xr.reshape(rows_p // fold, _LANES)
    frows = xr.shape[0]

    tile, vmem_limit = _tile_and_vmem(frows, _LANES, xr.dtype)
    grid = _cdiv(frows, tile)

    wf = jnp.tile(gamma_f32.reshape(1, hidden), (1, fold))
    bf = jnp.tile(beta_f32.reshape(1, hidden), (1, fold))
    seg_ids = jnp.arange(_LANES, dtype=jnp.int32) // hidden
    seg_mat = (seg_ids[:, None] == seg_ids[None, :]).astype(jnp.float32)

    kernel = functools.partial(_ln_folded_kernel, eps=eps, inv_h=1.0 / hidden)

    out = pl.pallas_call(
        kernel,
        out_shape=jax.ShapeDtypeStruct((frows, _LANES), x2.dtype),
        grid_spec=pltpu.PrefetchScalarGridSpec(
            num_scalar_prefetch=0,
            grid=(grid,),
            in_specs=[
                pl.BlockSpec((tile, _LANES), lambda i: (i, 0)),
                pl.BlockSpec((1, _LANES), lambda i: (0, 0)),        # gamma
                pl.BlockSpec((1, _LANES), lambda i: (0, 0)),        # beta
                pl.BlockSpec((_LANES, _LANES), lambda i: (0, 0)),   # seg mat
            ],
            out_specs=pl.BlockSpec((tile, _LANES), lambda i: (i, 0)),
        ),
        compiler_params=pltpu.CompilerParams(
            dimension_semantics=("parallel",),
            vmem_limit_bytes=vmem_limit,
        ),
    )(xr, wf, bf, seg_mat)

    out = out.reshape(rows_p, hidden)            # free reshape back
    return out if rows_p == rows else out[:rows]


# ---------------------------------------------------------------------------
# Public entry point
# ---------------------------------------------------------------------------
def fused_layer_norm(x, weight, bias, *, eps=1e-5, zero_centered_gamma=False,
                     scale_shift_in_input_dtype=None):
    """Forward of Megatron-Core FusedLayerNorm: LayerNorm over the last dim.

    scale_shift_in_input_dtype: None = auto (bf16 affine on v6e/v7x for
    low-precision inputs, f32 affine otherwise); True/False to force.
    """
    orig_shape = x.shape
    hidden = orig_shape[-1]
    rows = int(math.prod(orig_shape[:-1])) if len(orig_shape) > 1 else 1
    x2 = x.reshape(rows, hidden)

    # Hoist gamma(+1)/beta preparation out of the kernel (tiny (hidden,) work).
    gamma = weight.astype(jnp.float32)
    if zero_centered_gamma:
        gamma = gamma + 1.0
    beta = bias.astype(jnp.float32)

    if hidden < _LANES and _LANES % hidden == 0:
        # TODO(synk): hidden < 128 that does not divide 128 (e.g. 48, 96)
        # falls through to the row-tiled path with a lane-sparse store.
        out = _ln_folded(x2, gamma, beta, eps=eps)
    else:
        if scale_shift_in_input_dtype is None:
            _, _, lowp_default, _ = _chip_params()
            scale_shift_in_input_dtype = (lowp_default
                                          and x.dtype != jnp.float32)
        affine_in_input_dtype = bool(scale_shift_in_input_dtype) and (
            x.dtype != jnp.float32)
        affine_dtype = x2.dtype if affine_in_input_dtype else jnp.float32
        out = _ln_rows(x2,
                       gamma.astype(affine_dtype).reshape(1, hidden),
                       beta.astype(affine_dtype).reshape(1, hidden),
                       eps=eps,
                       affine_in_input_dtype=affine_in_input_dtype)
    return out.reshape(orig_shape)


if __name__ == "__main__":
    eps = 1e-5

    def ref_ln(x, w, b, eps_, zcg):
        g = (w.astype(jnp.float32) + 1.0) if zcg else w.astype(jnp.float32)
        xf = x.astype(jnp.float32)
        mean = jnp.mean(xf, axis=-1, keepdims=True)
        xc = xf - mean
        var = jnp.mean(xc * xc, axis=-1, keepdims=True)
        y = xc * jax.lax.rsqrt(var + eps_) * g + b.astype(jnp.float32)
        return y.astype(x.dtype)

    # Module config: hidden_size=32, eps=1e-5, zero_centered_gamma=False.
    # (hidden < 128 -> lane-folded path)
    seq, batch, hidden = 8, 2, 32
    key = jax.random.PRNGKey(0)
    x = jax.random.normal(key, (seq, batch, hidden), dtype=jnp.float32)
    weight = jnp.ones((hidden,), dtype=jnp.float32)   # reset_parameters()
    bias = jnp.zeros((hidden,), dtype=jnp.float32)

    y = fused_layer_norm(x, weight, bias, eps=eps, zero_centered_gamma=False)
    jax.block_until_ready(y)
    assert y.shape == x.shape
    assert jnp.allclose(y, ref_ln(x, weight, bias, eps, False),
                        atol=1e-4, rtol=1e-4)

    # Row-tiled (hidden >= 128) path, zero_centered_gamma, non-divisible rows.
    k1, k2, k3 = jax.random.split(jax.random.PRNGKey(0), 3)
    hidden2 = 256
    x_b = jax.random.normal(k1, (4, 3, hidden2), dtype=jnp.float32)
    w_b = 0.1 * jax.random.normal(k2, (hidden2,), dtype=jnp.float32)
    b_b = 0.1 * jax.random.normal(k3, (hidden2,), dtype=jnp.float32)
    y_b = fused_layer_norm(x_b, w_b, b_b, eps=eps, zero_centered_gamma=True)
    jax.block_until_ready(y_b)
    assert jnp.allclose(y_b, ref_ln(x_b, w_b, b_b, eps, True),
                        atol=1e-5, rtol=1e-5)

    # bf16 input: exercises the multi-block grid split and (on v6e/v7x) the
    # auto low-precision affine path.
    k4, k5, k6 = jax.random.split(jax.random.PRNGKey(1), 3)
    x_c = jax.random.normal(k4, (16, 8, hidden2), dtype=jnp.bfloat16)
    w_c = (1.0 + 0.1 * jax.random.normal(k5, (hidden2,))).astype(jnp.bfloat16)
    b_c = (0.1 * jax.random.normal(k6, (hidden2,))).astype(jnp.bfloat16)
    y_c = fused_layer_norm(x_c, w_c, b_c, eps=eps)
    jax.block_until_ready(y_c)
    assert y_c.dtype == jnp.bfloat16
    assert jnp.allclose(y_c.astype(jnp.float32),
                        ref_ln(x_c, w_c, b_c, eps, False).astype(jnp.float32),
                        atol=5e-2, rtol=5e-2)

    print("KERNEL_OK")
</pallas_src>

<mosaic_0001>
module attributes {stable_mosaic.version = 11 : i64} {
  func.func @_ln_folded_kernel(%arg0: i32, %arg1: memref<4x128xf32, #tpu.memory_space<vmem>>, %arg2: memref<1x128xf32, #tpu.memory_space<vmem>>, %arg3: memref<1x128xf32, #tpu.memory_space<vmem>>, %arg4: memref<128x128xf32, #tpu.memory_space<vmem>>, %arg5: memref<4x128xf32, #tpu.memory_space<vmem>>) attributes {dimension_semantics = [#tpu.dimension_semantics<parallel>], iteration_bounds = array<i64: 1>, scalar_prefetch = 0 : i64, scratch_operands = 0 : i64, tpu.core_type = #tpu.core_type<tc>, window_params = [{transform_indices = @transform_0, window_bounds = array<i64: 4, 128>}, {pipeline_mode = #tpu.pipeline_mode<synchronous>, transform_indices = @transform_1, window_bounds = array<i64: 1, 128>}, {pipeline_mode = #tpu.pipeline_mode<synchronous>, transform_indices = @transform_2, window_bounds = array<i64: 1, 128>}, {pipeline_mode = #tpu.pipeline_mode<synchronous>, transform_indices = @transform_3, window_bounds = array<i64: 128, 128>}, {transform_indices = @transform_4, window_bounds = array<i64: 4, 128>}]} {
    %c0 = arith.constant 0 : index
    %c0_0 = arith.constant 0 : index
    %0 = vector.load %arg1[%c0, %c0_0] : memref<4x128xf32, #tpu.memory_space<vmem>>, vector<4x128xf32>
    %c0_1 = arith.constant 0 : index
    %c0_2 = arith.constant 0 : index
    %1 = vector.load %arg4[%c0_1, %c0_2] : memref<128x128xf32, #tpu.memory_space<vmem>>, vector<128x128xf32>
    %2 = arith.truncf %0 : vector<4x128xf32> to vector<4x128xbf16>
    %3 = arith.extf %2 : vector<4x128xbf16> to vector<4x128xf32>
    %4 = arith.subf %0, %3 : vector<4x128xf32>
    %cst = arith.constant dense<0.000000e+00> : vector<4x128xf32>
    %5 = tpu.matmul %3, %1, %cst {dimension_numbers = #tpu.dot_dimension_numbers<[1], [0], [0], [1], [0, 0, 1, 1], [], []>} : vector<4x128xf32>, vector<128x128xf32>, vector<4x128xf32> -> vector<4x128xf32>
    %cst_3 = arith.constant dense<0.000000e+00> : vector<4x128xf32>
    %6 = tpu.matmul %4, %1, %cst_3 {dimension_numbers = #tpu.dot_dimension_numbers<[1], [0], [0], [1], [0, 0, 1, 1], [], []>} : vector<4x128xf32>, vector<128x128xf32>, vector<4x128xf32> -> vector<4x128xf32>
    %7 = arith.addf %5, %6 : vector<4x128xf32>
    %cst_4 = arith.constant 3.125000e-02 : f32
    %8 = vector.broadcast %cst_4 : f32 to vector<4x128xf32>
    %9 = arith.mulf %7, %8 : vector<4x128xf32>
    %10 = arith.subf %0, %9 : vector<4x128xf32>
    %11 = arith.mulf %10, %10 : vector<4x128xf32>
    %12 = arith.truncf %11 : vector<4x128xf32> to vector<4x128xbf16>
    %13 = arith.extf %12 : vector<4x128xbf16> to vector<4x128xf32>
    %14 = arith.subf %11, %13 : vector<4x128xf32>
    %cst_5 = arith.constant dense<0.000000e+00> : vector<4x128xf32>
    %15 = tpu.matmul %13, %1, %cst_5 {dimension_numbers = #tpu.dot_dimension_numbers<[1], [0], [0], [1], [0, 0, 1, 1], [], []>} : vector<4x128xf32>, vector<128x128xf32>, vector<4x128xf32> -> vector<4x128xf32>
    %cst_6 = arith.constant dense<0.000000e+00> : vector<4x128xf32>
    %16 = tpu.matmul %14, %1, %cst_6 {dimension_numbers = #tpu.dot_dimension_numbers<[1], [0], [0], [1], [0, 0, 1, 1], [], []>} : vector<4x128xf32>, vector<128x128xf32>, vector<4x128xf32> -> vector<4x128xf32>
    %17 = arith.addf %15, %16 : vector<4x128xf32>
    %cst_7 = arith.constant 3.125000e-02 : f32
    %18 = vector.broadcast %cst_7 : f32 to vector<4x128xf32>
    %19 = arith.mulf %17, %18 : vector<4x128xf32>
    %cst_8 = arith.constant 9.99999974E-6 : f32
    %20 = vector.broadcast %cst_8 : f32 to vector<4x128xf32>
    %21 = arith.addf %19, %20 : vector<4x128xf32>
    %22 = math.rsqrt %21 : vector<4x128xf32>
    %23 = arith.mulf %10, %22 : vector<4x128xf32>
    %c0_9 = arith.constant 0 : index
    %c0_10 = arith.constant 0 : index
    %24 = vector.load %arg2[%c0_9, %c0_10] : memref<1x128xf32, #tpu.memory_space<vmem>>, vector<1x128xf32>
    %25 = vector.broadcast %24 : vector<1x128xf32> to vector<4x128xf32>
    %26 = arith.mulf %23, %25 : vector<4x128xf32>
    %c0_11 = arith.constant 0 : index
    %c0_12 = arith.constant 0 : index
    %27 = vector.load %arg3[%c0_11, %c0_12] : memref<1x128xf32, #tpu.memory_space<vmem>>, vector<1x128xf32>
    %28 = vector.broadcast %27 : vector<1x128xf32> to vector<4x128xf32>
    %29 = arith.addf %26, %28 : vector<4x128xf32>
    %c0_13 = arith.constant 0 : index
    %c0_14 = arith.constant 0 : index
    %30 = vector.load %arg5[%c0_13, %c0_14] : memref<4x128xf32, #tpu.memory_space<vmem>>, vector<4x128xf32>
    tpu.vector_store %arg5[%c0_13, %c0_14], %29 {strides = array<i32>} : memref<4x128xf32, #tpu.memory_space<vmem>>, vector<4x128xf32>,
    return
  }
  func.func @transform_0(%arg0: i32) -> (i32, i32) {
    %c0_i32 = arith.constant 0 : i32
    %c0_i32_0 = arith.constant 0 : i32
    return %arg0, %c0_i32 : i32, i32
  }
  func.func @transform_1(%arg0: i32) -> (i32, i32) {
    %c0_i32 = arith.constant 0 : i32
    %c0_i32_0 = arith.constant 0 : i32
    %c0_i32_1 = arith.constant 0 : i32
    return %c0_i32, %c0_i32_0 : i32, i32
  }
  func.func @transform_2(%arg0: i32) -> (i32, i32) {
    %c0_i32 = arith.constant 0 : i32
    %c0_i32_0 = arith.constant 0 : i32
    %c0_i32_1 = arith.constant 0 : i32
    return %c0_i32, %c0_i32_0 : i32, i32
  }
  func.func @transform_3(%arg0: i32) -> (i32, i32) {
    %c0_i32 = arith.constant 0 : i32
    %c0_i32_0 = arith.constant 0 : i32
    %c0_i32_1 = arith.constant 0 : i32
    return %c0_i32, %c0_i32_0 : i32, i32
  }
  func.func @transform_4(%arg0: i32) -> (i32, i32) {
    %c0_i32 = arith.constant 0 : i32
    %c0_i32_0 = arith.constant 0 : i32
    return %arg0, %c0_i32 : i32, i32
  }
}

</mosaic_0001>

<bundles_post_ra>
// kernel: tpu_custom_call.1
= control target key start
LH: loop header
LB: loop body
LE: loop exit
PB: predicated region body
PF: predicated region fallthrough
CT: control target
= control target key end

     0   :  { %9 = vsyncpa [#allocation3], 0  ;;  %s937_s0 = inlined_call_operand.hbm [shape: f32[4,128], index: 0, kind: input, shape index: {}]   ;;  %s938_s1 = inlined_call_operand.vmem [shape: f32[1,128], index: 1, kind: input, shape index: {}]   ;;  %s939_s2 = inlined_call_operand.vmem [shape: f32[1,128], index: 2, kind: input, shape index: {}]   ;;  %s940_s3 = inlined_call_operand.hbm [shape: f32[128,128], index: 3, kind: input, shape index: {}]   ;;  %s941_s4 = inlined_call_operand.hbm [shape: f32[4,128], index: 4, kind: output, shape index: {}]  }
   0x1   :  { %10 = vsyncpa [#allocation6], 0 }
   0x2   :  { %11 = vsyncpa [#allocation4], 0  ;;  %s779_s15 = smov [#allocation2]   ;;  %s780_s17 = smov [#allocation5]  }
   0x3   :  { %s18_s16 = sshll.u32 %s779_s15, 4  ;;  %s31_s18 = sshll.u32 %s780_s17, 4  ;;  %s19_s16 = int_to_ptr.vmem [resolvable:$true] %s18_s16  ;;  %s812_s18 = int_to_ptr.vmem [resolvable:$true] %s31_s18 }
   0x4   :  { %s707_s21 = scalar_lea.hbm %s937_s0, 64 }
   0x5   :  { %p708_p0 = scmp.ne.s32.totalorder %s937_s0, %s707_s21  ;;  %p711_p1 = scmp.lt.u32.totalorder %s707_s21, %s937_s0 }
   0x7   :  { %p713_p2 = pnand %p711_p1, %p708_p0 }
   0x9   :  { %716 = shalt.err (!%p713_p2)
}
   0xa   :  { %s717_s26 = scalar_lea.vmem %s19_s16, 64  ;;  %p722_p4 = scmp.lt.s32.totalorder %s19_s16, %s19_s16 }
   0xb   :  { %p718_p3 = scmp.ne.s32.totalorder %s19_s16, %s717_s26  ;;  %p723_p5 = scmp.lt.s32.totalorder %s717_s26, %s717_s26 }
   0xd   :  { %p724_p6 = por %p723_p5, %p722_p4 }
   0xf   :  { %p725_p7 = pnand %p724_p6, %p718_p3 }
  0x11   :  { %728 = shalt.err (!%p725_p7)
}
  0x12   :  { %21 = dma.hbm_to_vmem [thread:$0]  %s937_s0, 64, %s19_s16, [#allocation3]  }
  0x13   :  { %s729_s5 = scalar_lea.hbm %s940_s3, 2048 }
  0x14   :  { %p730_p8 = scmp.ne.s32.totalorder %s940_s3, %s729_s5  ;;  %p733_p9 = scmp.lt.u32.totalorder %s729_s5, %s940_s3 }
  0x16   :  { %p735_p10 = pnand %p733_p9, %p730_p8 }
  0x18   :  { %738 = shalt.err (!%p735_p10)
}
  0x19   :  { %s739_s10 = scalar_lea.vmem %s812_s18, 2048  ;;  %p744_p12 = scmp.lt.s32.totalorder %s812_s18, %s812_s18 }
  0x1a   :  { %p740_p11 = scmp.ne.s32.totalorder %s812_s18, %s739_s10  ;;  %p745_p13 = scmp.lt.s32.totalorder %s739_s10, %s739_s10 }
  0x1c   :  { %p746_p0 = por %p745_p13, %p744_p12 }
  0x1e   :  { %p747_p1 = pnand %p746_p0, %p740_p11 }
  0x20   :  { %750 = shalt.err (!%p747_p1)
}
  0x21   :  { %s781_s0 = smov 128   ;;  %s782_s11 = smov 8  }
  0x22   :  { %37 = dma.hbm_to_vmem [thread:$0]  %s940_s3, 2048, %s812_s18, [#allocation6], %s781_s0, %s781_s0, %s782_s11  }
  0x23   :  { %773 = dma.done.wait [#allocation3], 64  }
  0x24   :  { %774 = vsyncadd [#allocation3], 4294967232 }
  0x25   :  { %775 = dma.done.wait [#allocation6], 2048  }
  0x26   :  { %776 = vsyncadd [#allocation6], 4294965248  ;;  %v783_v0 = vmov 0.0|0.0   ;;  %vm784_vm0 = vmmov 0   ;;  %v785_v1 = vmov 0.0   ;;  %v45_v2 = vld [vmem:[#allocation5] sm:$0xff] }
  0x27   :  { %597 = vmatprep.subr.bf16.mxu0 %v783_v0  ;;  %489 = vmatprep.mubr.msk.f32.mxu0 %vm784_vm0, %v785_v1  ;;  %v46_v3 = vld [vmem:[#allocation5 + $0x8] sm:$0xff]  ;;  %v47_v4 = vld [vmem:[#allocation5 + $0x10] sm:$0xff]  ;;  %v48_v6 = vld [vmem:[#allocation5 + $0x18] sm:$0xff]  ;;  %s786_s17 = smov [#allocation7]  }
  0x28   :  { %645 = vmatprep.subr.bf16.mxu1 %v783_v0  ;;  %559 = vmatprep.mubr.msk.f32.mxu1 %vm784_vm0, %v785_v1  ;;  %v849_v5 = vpack.c.bf16 %v46_v3, %v45_v2  ;;  %v852_v7 = vpack.c.bf16 %v48_v6, %v47_v4  ;;  %v49_v8 = vld [vmem:[#allocation5 + $0x20] sm:$0xff]  ;;  %v50_v9 = vld [vmem:[#allocation5 + $0x28] sm:$0xff]  ;;  %v51_v11 = vld [vmem:[#allocation5 + $0x30] sm:$0xff]  ;;  %s377_s18 = sshll.u32 %s786_s17, 4  ;;  %s378_s18 = int_to_ptr.vmem [resolvable:$true] %s377_s18 }
  0x29   :  { %v858_v10 = vpack.c.bf16 %v50_v9, %v49_v8  ;;  %v52_v12 = vld [vmem:[#allocation5 + $0x38] sm:$0xff]  ;;  %v53_v14 = vld [vmem:[#allocation5 + $0x40] sm:$0xff]  ;;  %v54_v15 = vld [vmem:[#allocation5 + $0x48] sm:$0xff]  ;;  %s751_s19 = scalar_lea.vmem %s378_s18, 64  ;;  %p756_p3 = scmp.lt.s32.totalorder %s378_s18, %s378_s18 }
  0x2a   :  { %599 = vmatpush3.bf16.msra.mxu0 %v849_v5  ;;  %647 = vmatpush3.bf16.msra.mxu1 %v849_v5  ;;  %v864_v13 = vpack.c.bf16 %v52_v12, %v51_v11  ;;  %v870_v16 = vpack.c.bf16 %v54_v15, %v53_v14  ;;  %v55_v17 = vld [vmem:[#allocation5 + $0x50] sm:$0xff]  ;;  %v56_v18 = vld [vmem:[#allocation5 + $0x58] sm:$0xff]  ;;  %v57_v21 = vld [vmem:[#allocation5 + $0x60] sm:$0xff]  ;;  %p752_p2 = scmp.ne.s32.totalorder %s378_s18, %s751_s19  ;;  %p757_p4 = scmp.lt.s32.totalorder %s751_s19, %s751_s19 }
  0x2b   :  { %600 = vmatprep.subr.bf16.mxu0 %v783_v0  ;;  %648 = vmatprep.subr.bf16.mxu1 %v783_v0  ;;  %v876_v19 = vpack.c.bf16 %v56_v18, %v55_v17  ;;  %v44_v20 = vld [vmem:[#allocation2] sm:$0xf]  ;;  %v58_v22 = vld [vmem:[#allocation5 + $0x68] sm:$0xff]  ;;  %v59_v25 = vld [vmem:[#allocation5 + $0x70] sm:$0xff] }
  0x2c   :  { %v61_v23 = vpack.c.bf16 %v44_v20, %v44_v20  ;;  %v616_v24 = vpack.c.bf16 %v58_v22, %v57_v21  ;;  %v60_v26 = vld [vmem:[#allocation5 + $0x78] sm:$0xff]  ;;  %p758_p5 = por %p757_p4, %p756_p3 }
  0x2d   :  { %v619_v28 = vpack.c.bf16 %v60_v26, %v59_v25  ;;  %v387_v43 = vld [vmem:[%s938_s1] ss:$0 sm:$0xff] }
  0x2e   :  { %602 = vmatpush3.bf16.msra.mxu0 %v852_v7  ;;  %650 = vmatpush3.bf16.msra.mxu1 %v852_v7  ;;  %v62_v27 = vunpack.c.l.bf16 %v61_v23  ;;  %v388_v45 = vld [vmem:[%s939_s2] ss:$0 sm:$0xff]  ;;  %p759_p6 = pnand %p758_p5, %p752_p2 }
  0x2f   :  { %603 = vmatprep.subr.bf16.mxu0 %v783_v0  ;;  %651 = vmatprep.subr.bf16.mxu1 %v783_v0 }
  0x30   :  { %v63_v29 = vsub.f32 %v44_v20, %v62_v27 }
  0x32   :  { %605 = vmatpush3.bf16.msra.mxu0 %v858_v10  ;;  %653 = vmatpush3.bf16.msra.mxu1 %v858_v10 }
  0x33   :  { %606 = vmatprep.subr.bf16.mxu0 %v783_v0  ;;  %654 = vmatprep.subr.bf16.mxu1 %v783_v0 }
  0x36   :  { %608 = vmatpush3.bf16.msra.mxu0 %v864_v13  ;;  %656 = vmatpush3.bf16.msra.mxu1 %v864_v13 }
  0x37   :  { %609 = vmatprep.subr.bf16.mxu0 %v783_v0  ;;  %657 = vmatprep.subr.bf16.mxu1 %v783_v0 }
  0x3a   :  { %611 = vmatpush3.bf16.msra.mxu0 %v870_v16  ;;  %659 = vmatpush3.bf16.msra.mxu1 %v870_v16 }
  0x3b   :  { %612 = vmatprep.subr.bf16.mxu0 %v783_v0  ;;  %660 = vmatprep.subr.bf16.mxu1 %v783_v0 }
  0x3e   :  { %614 = vmatpush3.bf16.msra.mxu0 %v876_v19  ;;  %662 = vmatpush3.bf16.msra.mxu1 %v876_v19 }
  0x3f   :  { %615 = vmatprep.subr.bf16.mxu0 %v783_v0  ;;  %663 = vmatprep.subr.bf16.mxu1 %v783_v0 }
  0x42   :  { %617 = vmatpush3.bf16.msra.mxu0 %v616_v24  ;;  %665 = vmatpush3.bf16.msra.mxu1 %v616_v24 }
  0x43   :  { %618 = vmatprep.subr.bf16.mxu0 %v783_v0  ;;  %666 = vmatprep.subr.bf16.mxu1 %v783_v0 }
  0x46   :  { %620 = vmatpush3.bf16.msra.mxu0 %v619_v28  ;;  %668 = vmatpush3.bf16.msra.mxu1 %v619_v28 }
  0x47   :  { %621 = vmatprep.subr.bf16.mxu0 %v783_v0  ;;  %669 = vmatprep.subr.bf16.mxu1 %v783_v0 }
  0x49   :  { %490 = vmatmul.mubr.f32.vlgmr.msra.gmra.mrb[0].mxu0 %v63_v29 }
  0x4a   :  { %623 = vmatpush3.bf16.msra.mxu0 %v849_v5  ;;  %524 = vmatprep.mubr.msk.f32.mxu0 %vm784_vm0, %v785_v1 }
  0x4b   :  { %624 = vmatprep.subr.bf16.mxu0 %v783_v0 }
  0x4e   :  { %626 = vmatpush3.bf16.msra.mxu0 %v852_v7 }
  0x4f   :  { %627 = vmatprep.subr.bf16.mxu0 %v783_v0 }
  0x52   :  { %629 = vmatpush3.bf16.msra.mxu0 %v858_v10 }
  0x53   :  { %630 = vmatprep.subr.bf16.mxu0 %v783_v0 }
  0x56   :  { %632 = vmatpush3.bf16.msra.mxu0 %v864_v13 }
  0x57   :  { %633 = vmatprep.subr.bf16.mxu0 %v783_v0 }
  0x5a   :  { %635 = vmatpush3.bf16.msra.mxu0 %v870_v16 }
  0x5b   :  { %636 = vmatprep.subr.bf16.mxu0 %v783_v0 }
  0x5e   :  { %638 = vmatpush3.bf16.msra.mxu0 %v876_v19 }
  0x5f   :  { %639 = vmatprep.subr.bf16.mxu0 %v783_v0 }
  0x62   :  { %641 = vmatpush3.bf16.msra.mxu0 %v616_v24 }
  0x63   :  { %642 = vmatprep.subr.bf16.mxu0 %v783_v0 }
  0x66   :  { %644 = vmatpush3.bf16.msra.mxu0 %v619_v28 }
  0x69   :  { %525 = vmatmul.mubr.f32.vlgmr.msra.gmra.mrb[0].mxu0 %v62_v27 }
 0x13c   :  { %v200_v30 = vpop.f32.mrb[0].mxu0 }
 0x13d   :  { %v204_v31 = vmul.f32 0.03125, %v200_v30  ;;  %v526_v32 = vpop.f32.mrb[1].mxu0 }
 0x13f   :  { %v205_v33 = vsub.f32 %v44_v20, %v204_v31 }
 0x141   :  { %v206_v34 = vmul.f32 %v205_v33, %v205_v33 }
 0x143   :  { %v207_v35 = vpack.c.bf16 %v206_v34, %v206_v34 }
 0x145   :  { %v208_v36 = vunpack.c.l.bf16 %v207_v35 }
 0x147   :  { %v209_v37 = vsub.f32 %v206_v34, %v208_v36 }
 0x149   :  { %560 = vmatmul.mubr.f32.vlgmr.msra.gmra.mrb[0].mxu1 %v209_v37 }
 0x14a   :  { %671 = vmatpush3.bf16.msra.mxu1 %v849_v5  ;;  %594 = vmatprep.mubr.msk.f32.mxu1 %vm784_vm0, %v785_v1 }
 0x14b   :  { %672 = vmatprep.subr.bf16.mxu1 %v783_v0 }
 0x14e   :  { %674 = vmatpush3.bf16.msra.mxu1 %v852_v7 }
 0x14f   :  { %675 = vmatprep.subr.bf16.mxu1 %v783_v0 }
 0x152   :  { %677 = vmatpush3.bf16.msra.mxu1 %v858_v10 }
 0x153   :  { %678 = vmatprep.subr.bf16.mxu1 %v783_v0 }
 0x156   :  { %680 = vmatpush3.bf16.msra.mxu1 %v864_v13 }
 0x157   :  { %681 = vmatprep.subr.bf16.mxu1 %v783_v0 }
 0x15a   :  { %683 = vmatpush3.bf16.msra.mxu1 %v870_v16 }
 0x15b   :  { %684 = vmatprep.subr.bf16.mxu1 %v783_v0 }
 0x15e   :  { %686 = vmatpush3.bf16.msra.mxu1 %v876_v19 }
 0x15f   :  { %687 = vmatprep.subr.bf16.mxu1 %v783_v0 }
 0x162   :  { %689 = vmatpush3.bf16.msra.mxu1 %v616_v24 }
 0x163   :  { %690 = vmatprep.subr.bf16.mxu1 %v783_v0 }
 0x166   :  { %692 = vmatpush3.bf16.msra.mxu1 %v619_v28 }
 0x169   :  { %595 = vmatmul.mubr.f32.vlgmr.msra.gmra.mrb[0].mxu1 %v208_v36 }
 0x23c   :  { %v346_v38 = vpop.f32.mrb[0].mxu1 }
 0x23d   :  { %v350_v39 = vmul.f32 0.03125, %v346_v38  ;;  %v596_v40 = vpop.f32.mrb[1].mxu1 }
 0x23f   :  { %v351_v41 = vadd.f32 1e-05, %v350_v39 }
 0x241   :  { %705 = vrsqrt.f32 %v351_v41 }
 0x24b   :  { %v706_v42 = vpop.eup %705 }
 0x24c   :  { %v353_v44 = vmul.f32 %v706_v42, %v205_v33 }
 0x24e   :  { %v361_v46 = vmul.f32 %v387_v43, %v353_v44 }
 0x250   :  { %v369_v47 = vadd.f32 %v388_v45, %v361_v46 }
 0x252   :  { %370 = vst [vmem:[#allocation7] sm:$0xf] %v369_v47 }
 0x253   :  { %762 = shalt.err (!%p759_p6)
}
 0x254   :  { %s763_s21 = scalar_lea.hbm %s941_s4, 64 }
 0x255   :  { %p764_p7 = scmp.ne.s32.totalorder %s941_s4, %s763_s21  ;;  %p767_p8 = scmp.lt.u32.totalorder %s763_s21, %s941_s4 }
 0x257   :  { %p769_p9 = pnand %p767_p8, %p764_p7 }
 0x259   :  { %772 = shalt.err (!%p769_p9)
}
 0x25a   :  { %380 = dma.vmem_to_hbm [thread:$0]  %s378_s18, 64, %s941_s4, [#allocation4]  }
 0x25b   :  { %777 = dma.done.wait [#allocation4], 64  }
 0x25c   :  { %778 = vsyncadd [#allocation4], 4294967232 }
 0x25d   :  { %384 = vsyncpa [#allocation3], 1 }
 0x25e   :  { %385 = vsyncpa [#allocation6], 1 }
 0x25f   :  { %386 = vsyncpa [#allocation4], 1 }

</bundles_post_ra>
